<compile_context>
chip_gen: v7x
topology: tpu7x:2x2x1
jax: 0.10.0
libtpu: 0.0.40
codegen_flags: <defaults>
</compile_context>

<pallas_src>
import functools

import jax
import jax.numpy as jnp
from jax import lax
from jax.experimental import pallas as pl
from jax.experimental.pallas import tpu as pltpu

# Fixed, non-trainable Sobel kernels (same as the PyTorch module's __init__).
_X_KERNEL = [[1.0, 0.0, -1.0],
             [2.0, 0.0, -2.0],
             [1.0, 0.0, -1.0]]
_Y_KERNEL = [[1.0, 2.0, 1.0],
             [0.0, 0.0, 0.0],
             [-1.0, -2.0, -1.0]]


def _largest_divisor_leq(n, cap):
    """Largest divisor of n (n >= 1) that is <= cap."""
    cap = max(1, min(int(cap), int(n)))
    for d in range(cap, 0, -1):
        if n % d == 0:
            return d
    return 1


def _sobel_kernel(x_ref, o_ref, *, img_w, chunk, pow2_pack, epsilon):
    """One block = (tb, h, gw); inner loop over chunks of `chunk` images."""
    tb, h, gw = x_ref.shape
    trips = tb // chunk

    # Shift-validity masks (zero padding at per-image boundaries), built once
    # per grid step at the chunk shape and reused by all shifts/iterations.
    row = lax.broadcasted_iota(jnp.int32, (chunk, h, gw), 1)
    col = lax.broadcasted_iota(jnp.int32, (chunk, h, gw), 2)
    cw = (col & (img_w - 1)) if pow2_pack else col   # per-image column
    h_m1 = cw >= 1                 # source column j-1 inside the image
    h_p1 = cw <= img_w - 2         # source column j+1 inside the image
    v_m1 = row >= 1                # source row i-1 inside the image
    v_p1 = row <= h - 2            # source row i+1 inside the image

    def shift(a, d, axis, mask):
        # result[..., k] = a[..., k + d] inside the image, 0 outside.
        return jnp.where(mask, jnp.roll(a, -d, axis=axis), 0.0)

    def body(i, carry):
        start = pl.multiple_of(i * chunk, chunk)
        img = x_ref[pl.ds(start, chunk)].astype(jnp.float32)  # (chunk, h, gw)

        # 3x3 avg pool (stride 1, pad 1, count_include_pad -> /9), separable.
        hs = shift(img, -1, 2, h_m1) + img + shift(img, 1, 2, h_p1)
        pooled = (shift(hs, -1, 1, v_m1) + hs + shift(hs, 1, 1, v_p1)) * (1.0 / 9.0)

        # Separable Sobel (cross-correlation orientation, like nn.Conv2d):
        #   X = [1,2,1]^T (x) [1,0,-1],   Y = [1,0,-1]^T (x) [1,2,1]
        p_l = shift(pooled, -1, 2, h_m1)      # pooled at column j-1
        p_r = shift(pooled, 1, 2, h_p1)       # pooled at column j+1
        h_a = p_l + 2.0 * pooled + p_r        # row kernel [1, 2, 1]
        h_b = p_l - p_r                       # row kernel [1, 0, -1]
        gx = shift(h_b, -1, 1, v_m1) + 2.0 * h_b + shift(h_b, 1, 1, v_p1)
        gy = shift(h_a, -1, 1, v_m1) - shift(h_a, 1, 1, v_p1)

        # sqrt((gx/4)^2 + (gy/4)^2 + eps) == 0.25 * sqrt(gx^2 + gy^2 + 16*eps)
        out = 0.25 * jnp.sqrt(gx * gx + gy * gy + (16.0 * epsilon))
        o_ref[pl.ds(start, chunk)] = out.astype(o_ref.dtype)
        return carry

    lax.fori_loop(0, trips, body, 0, unroll=(trips <= 8))


def sobel_operator(x, epsilon):
    """x: (b, c, h, w) float (f32 or bf16) -> (b, c, h, w), same dtype."""
    b, c, h, w = x.shape
    n = b * c
    dtype = x.dtype

    # ---- lane-dense packing / padding along W ------------------------------
    if w % 128 == 0:
        g, gw, w_pad = 1, w, w              # already lane dense, no repack
    elif 128 % w == 0:
        g, gw, w_pad = 128 // w, 128, w     # pack g images side by side (w=2^k)
    else:
        w_pad = ((w + 127) // 128) * 128    # pad W up to a multiple of 128
        g, gw = 1, w_pad

    x_flat = x.reshape(n, h, w)
    if g > 1:
        n_pad = (-n) % g
        if n_pad:                           # single pad, fused with the repack
            x_flat = jnp.pad(x_flat, ((0, n_pad), (0, 0), (0, 0)))
        ng = (n + n_pad) // g
        x_packed = (x_flat.reshape(ng, g, h, w)
                    .transpose(0, 2, 1, 3)
                    .reshape(ng, h, gw))
    else:
        ng = n
        x_packed = x_flat if w_pad == w else jnp.pad(
            x_flat, ((0, 0), (0, 0), (0, w_pad - w)))

    # ---- grid / block sizing ------------------------------------------------
    group_bytes = h * gw * 4
    target_tb = max(1, (2 << 20) // group_bytes)       # ~2 MiB f32 input / step
    if ng >= 2 and ng % 2 == 0:
        tb = _largest_divisor_leq(ng // 2, target_tb)  # even #steps (v7x 2 TCs)
    else:
        tb = _largest_divisor_leq(ng, target_tb)       # exact divisor: no pad
    ng_pad = 0
    if tb < max(1, target_tb // 8) and ng > target_tb:
        # Awkward ng (e.g. large prime): one padded partial block is cheaper
        # than many tiny grid steps.
        tb = target_tb
        ng_pad = (-ng) % tb
        if ng_pad:
            x_packed = jnp.pad(x_packed, ((0, ng_pad), (0, 0), (0, 0)))
    num_blocks = (ng + ng_pad) // tb
    # In-kernel chunk: keep the ~8 live f32 temporaries inside the 64-vreg file.
    chunk = _largest_divisor_leq(tb, max(1, 4096 // (h * gw)))
    # NOTE: a single image larger than the chunk target (huge h*w) still spills
    # its temporaries to VMEM; the 48 MiB limit below leaves headroom for that.

    out_packed = pl.pallas_call(
        functools.partial(_sobel_kernel, img_w=w, chunk=chunk,
                          pow2_pack=(g > 1), epsilon=float(epsilon)),
        out_shape=jax.ShapeDtypeStruct((num_blocks * tb, h, gw), dtype),
        grid_spec=pltpu.PrefetchScalarGridSpec(
            num_scalar_prefetch=0,
            grid=(num_blocks,),
            in_specs=[pl.BlockSpec((tb, h, gw), lambda i: (i, 0, 0))],
            out_specs=pl.BlockSpec((tb, h, gw), lambda i: (i, 0, 0)),
        ),
        compiler_params=pltpu.CompilerParams(
            dimension_semantics=("parallel",),
            vmem_limit_bytes=48 * 1024 * 1024),
    )(x_packed)

    # ---- unpack --------------------------------------------------------------
    out_packed = out_packed[:ng]
    if g > 1:
        out = (out_packed.reshape(ng, h, g, w)
               .transpose(0, 2, 1, 3)
               .reshape(ng * g, h, w)[:n])
    else:
        out = out_packed if w_pad == w else out_packed[:, :, :w]
    return out.reshape(b, c, h, w)


def _reference(x, epsilon):
    """Pure-JAX reference (same math, explicit zero padding)."""
    b, c, h, w = x.shape
    img = x.reshape(b * c, h, w).astype(jnp.float32)
    pad = jnp.pad(img, ((0, 0), (1, 1), (1, 1)))
    pooled = jnp.zeros_like(img)
    for di in range(3):
        for dj in range(3):
            pooled = pooled + pad[:, di:di + h, dj:dj + w]
    pooled = pooled / 9.0
    padp = jnp.pad(pooled, ((0, 0), (1, 1), (1, 1)))
    gx = jnp.zeros_like(pooled)
    gy = jnp.zeros_like(pooled)
    for di in range(3):
        for dj in range(3):
            s = padp[:, di:di + h, dj:dj + w]
            gx = gx + (_X_KERNEL[di][dj] * 0.25) * s
            gy = gy + (_Y_KERNEL[di][dj] * 0.25) * s
    out = jnp.sqrt(gx * gx + gy * gy + epsilon)
    return out.reshape(b, c, h, w).astype(x.dtype)


if __name__ == "__main__":
    epsilon = 1e-4

    # Case 1: nominal small shape (w=16 -> 8 images packed per 128-lane row).
    x1 = jax.random.normal(jax.random.PRNGKey(0), (2, 4, 16, 16), jnp.float32)
    y1 = jax.block_until_ready(sobel_operator(x1, epsilon))
    r1 = _reference(x1, epsilon)
    assert y1.shape == x1.shape
    assert jnp.allclose(y1, r1, atol=1e-5, rtol=1e-5), "mismatch (case 1)"

    # Case 2: multi-chunk inner loop and an even, 2-step parallel grid.
    x2 = jax.random.normal(jax.random.PRNGKey(1), (4, 8, 32, 32), jnp.float32)
    y2 = jax.block_until_ready(sobel_operator(x2, epsilon))
    r2 = _reference(x2, epsilon)
    assert jnp.allclose(y2, r2, atol=1e-5, rtol=1e-5), "mismatch (case 2)"

    # Case 3: width that neither divides nor is a multiple of 128 (pad-W path).
    x3 = jax.random.normal(jax.random.PRNGKey(2), (1, 2, 16, 24), jnp.float32)
    y3 = jax.block_until_ready(sobel_operator(x3, epsilon))
    r3 = _reference(x3, epsilon)
    assert jnp.allclose(y3, r3, atol=1e-5, rtol=1e-5), "mismatch (case 3)"

    print("KERNEL_OK")
</pallas_src>

<mosaic_0001>
module attributes {stable_mosaic.version = 11 : i64} {
  func.func @_sobel_kernel(%arg0: i32, %arg1: memref<1x16x128xf32, #tpu.memory_space<vmem>>, %arg2: memref<1x16x128xf32, #tpu.memory_space<vmem>>) attributes {dimension_semantics = [#tpu.dimension_semantics<parallel>], iteration_bounds = array<i64: 1>, scalar_prefetch = 0 : i64, scratch_operands = 0 : i64, tpu.core_type = #tpu.core_type<tc>, window_params = [{transform_indices = @transform_0, window_bounds = array<i64: 1, 16, 128>}, {transform_indices = @transform_1, window_bounds = array<i64: 1, 16, 128>}]} {
    %0 = tpu.iota {dimensions = array<i32: 1>} : vector<1x16x128xi32>
    %1 = tpu.iota {dimensions = array<i32: 2>} : vector<1x16x128xi32>
    %c15_i32 = arith.constant 15 : i32
    %2 = vector.broadcast %c15_i32 : i32 to vector<1x16x128xi32>
    %3 = arith.andi %1, %2 : vector<1x16x128xi32>
    %c1_i32 = arith.constant 1 : i32
    %4 = vector.broadcast %c1_i32 : i32 to vector<1x16x128xi32>
    %5 = arith.cmpi sge, %3, %4 : vector<1x16x128xi32>
    %c14_i32 = arith.constant 14 : i32
    %6 = vector.broadcast %c14_i32 : i32 to vector<1x16x128xi32>
    %7 = arith.cmpi sle, %3, %6 : vector<1x16x128xi32>
    %c1_i32_0 = arith.constant 1 : i32
    %8 = vector.broadcast %c1_i32_0 : i32 to vector<1x16x128xi32>
    %9 = arith.cmpi sge, %0, %8 : vector<1x16x128xi32>
    %c14_i32_1 = arith.constant 14 : i32
    %10 = vector.broadcast %c14_i32_1 : i32 to vector<1x16x128xi32>
    %11 = arith.cmpi sle, %0, %10 : vector<1x16x128xi32>
    %c0_i32 = arith.constant 0 : i32
    %c1_i32_2 = arith.constant 1 : i32
    %12 = arith.muli %c0_i32, %c1_i32_2 : i32
    %13 = tpu.assume_multiple %12, 1 : i32
    %14 = arith.index_cast %13 : i32 to index
    %c0 = arith.constant 0 : index
    %c0_3 = arith.constant 0 : index
    %15 = vector.load %arg1[%14, %c0, %c0_3] : memref<1x16x128xf32, #tpu.memory_space<vmem>>, vector<1x16x128xf32>
    %16 = vector.extract_strided_slice %15 {offsets = [0, 0, 127], sizes = [1, 16, 1], strides = [1, 1, 1]} : vector<1x16x128xf32> to vector<1x16x1xf32>
    %17 = vector.extract_strided_slice %15 {offsets = [0, 0, 0], sizes = [1, 16, 127], strides = [1, 1, 1]} : vector<1x16x128xf32> to vector<1x16x127xf32>
    %18 = tpu.concatenate %16, %17 in 2 : vector<1x16x1xf32>, vector<1x16x127xf32> -> vector<1x16x128xf32>
    %cst = arith.constant 0.000000e+00 : f32
    %19 = vector.broadcast %cst : f32 to vector<1x16x128xf32>
    %20 = arith.select %5, %18, %19 : vector<1x16x128xi1>, vector<1x16x128xf32>
    %21 = arith.addf %20, %15 : vector<1x16x128xf32>
    %22 = vector.extract_strided_slice %15 {offsets = [0, 0, 1], sizes = [1, 16, 127], strides = [1, 1, 1]} : vector<1x16x128xf32> to vector<1x16x127xf32>
    %23 = vector.extract_strided_slice %15 {offsets = [0, 0, 0], sizes = [1, 16, 1], strides = [1, 1, 1]} : vector<1x16x128xf32> to vector<1x16x1xf32>
    %24 = tpu.concatenate %22, %23 in 2 : vector<1x16x127xf32>, vector<1x16x1xf32> -> vector<1x16x128xf32>
    %cst_4 = arith.constant 0.000000e+00 : f32
    %25 = vector.broadcast %cst_4 : f32 to vector<1x16x128xf32>
    %26 = arith.select %7, %24, %25 : vector<1x16x128xi1>, vector<1x16x128xf32>
    %27 = arith.addf %21, %26 : vector<1x16x128xf32>
    %28 = vector.extract_strided_slice %27 {offsets = [0, 15, 0], sizes = [1, 1, 128], strides = [1, 1, 1]} : vector<1x16x128xf32> to vector<1x1x128xf32>
    %29 = vector.extract_strided_slice %27 {offsets = [0, 0, 0], sizes = [1, 15, 128], strides = [1, 1, 1]} : vector<1x16x128xf32> to vector<1x15x128xf32>
    %30 = tpu.concatenate %28, %29 in 1 : vector<1x1x128xf32>, vector<1x15x128xf32> -> vector<1x16x128xf32>
    %cst_5 = arith.constant 0.000000e+00 : f32
    %31 = vector.broadcast %cst_5 : f32 to vector<1x16x128xf32>
    %32 = arith.select %9, %30, %31 : vector<1x16x128xi1>, vector<1x16x128xf32>
    %33 = arith.addf %32, %27 : vector<1x16x128xf32>
    %34 = vector.extract_strided_slice %27 {offsets = [0, 1, 0], sizes = [1, 15, 128], strides = [1, 1, 1]} : vector<1x16x128xf32> to vector<1x15x128xf32>
    %35 = vector.extract_strided_slice %27 {offsets = [0, 0, 0], sizes = [1, 1, 128], strides = [1, 1, 1]} : vector<1x16x128xf32> to vector<1x1x128xf32>
    %36 = tpu.concatenate %34, %35 in 1 : vector<1x15x128xf32>, vector<1x1x128xf32> -> vector<1x16x128xf32>
    %cst_6 = arith.constant 0.000000e+00 : f32
    %37 = vector.broadcast %cst_6 : f32 to vector<1x16x128xf32>
    %38 = arith.select %11, %36, %37 : vector<1x16x128xi1>, vector<1x16x128xf32>
    %39 = arith.addf %33, %38 : vector<1x16x128xf32>
    %cst_7 = arith.constant 0.111111112 : f32
    %40 = vector.broadcast %cst_7 : f32 to vector<1x16x128xf32>
    %41 = arith.mulf %39, %40 : vector<1x16x128xf32>
    %42 = vector.extract_strided_slice %41 {offsets = [0, 0, 127], sizes = [1, 16, 1], strides = [1, 1, 1]} : vector<1x16x128xf32> to vector<1x16x1xf32>
    %43 = vector.extract_strided_slice %41 {offsets = [0, 0, 0], sizes = [1, 16, 127], strides = [1, 1, 1]} : vector<1x16x128xf32> to vector<1x16x127xf32>
    %44 = tpu.concatenate %42, %43 in 2 : vector<1x16x1xf32>, vector<1x16x127xf32> -> vector<1x16x128xf32>
    %cst_8 = arith.constant 0.000000e+00 : f32
    %45 = vector.broadcast %cst_8 : f32 to vector<1x16x128xf32>
    %46 = arith.select %5, %44, %45 : vector<1x16x128xi1>, vector<1x16x128xf32>
    %47 = vector.extract_strided_slice %41 {offsets = [0, 0, 1], sizes = [1, 16, 127], strides = [1, 1, 1]} : vector<1x16x128xf32> to vector<1x16x127xf32>
    %48 = vector.extract_strided_slice %41 {offsets = [0, 0, 0], sizes = [1, 16, 1], strides = [1, 1, 1]} : vector<1x16x128xf32> to vector<1x16x1xf32>
    %49 = tpu.concatenate %47, %48 in 2 : vector<1x16x127xf32>, vector<1x16x1xf32> -> vector<1x16x128xf32>
    %cst_9 = arith.constant 0.000000e+00 : f32
    %50 = vector.broadcast %cst_9 : f32 to vector<1x16x128xf32>
    %51 = arith.select %7, %49, %50 : vector<1x16x128xi1>, vector<1x16x128xf32>
    %cst_10 = arith.constant 2.000000e+00 : f32
    %52 = vector.broadcast %cst_10 : f32 to vector<1x16x128xf32>
    %53 = arith.mulf %52, %41 : vector<1x16x128xf32>
    %54 = arith.addf %46, %53 : vector<1x16x128xf32>
    %55 = arith.addf %54, %51 : vector<1x16x128xf32>
    %56 = arith.subf %46, %51 : vector<1x16x128xf32>
    %57 = vector.extract_strided_slice %56 {offsets = [0, 15, 0], sizes = [1, 1, 128], strides = [1, 1, 1]} : vector<1x16x128xf32> to vector<1x1x128xf32>
    %58 = vector.extract_strided_slice %56 {offsets = [0, 0, 0], sizes = [1, 15, 128], strides = [1, 1, 1]} : vector<1x16x128xf32> to vector<1x15x128xf32>
    %59 = tpu.concatenate %57, %58 in 1 : vector<1x1x128xf32>, vector<1x15x128xf32> -> vector<1x16x128xf32>
    %cst_11 = arith.constant 0.000000e+00 : f32
    %60 = vector.broadcast %cst_11 : f32 to vector<1x16x128xf32>
    %61 = arith.select %9, %59, %60 : vector<1x16x128xi1>, vector<1x16x128xf32>
    %cst_12 = arith.constant 2.000000e+00 : f32
    %62 = vector.broadcast %cst_12 : f32 to vector<1x16x128xf32>
    %63 = arith.mulf %62, %56 : vector<1x16x128xf32>
    %64 = arith.addf %61, %63 : vector<1x16x128xf32>
    %65 = vector.extract_strided_slice %56 {offsets = [0, 1, 0], sizes = [1, 15, 128], strides = [1, 1, 1]} : vector<1x16x128xf32> to vector<1x15x128xf32>
    %66 = vector.extract_strided_slice %56 {offsets = [0, 0, 0], sizes = [1, 1, 128], strides = [1, 1, 1]} : vector<1x16x128xf32> to vector<1x1x128xf32>
    %67 = tpu.concatenate %65, %66 in 1 : vector<1x15x128xf32>, vector<1x1x128xf32> -> vector<1x16x128xf32>
    %cst_13 = arith.constant 0.000000e+00 : f32
    %68 = vector.broadcast %cst_13 : f32 to vector<1x16x128xf32>
    %69 = arith.select %11, %67, %68 : vector<1x16x128xi1>, vector<1x16x128xf32>
    %70 = arith.addf %64, %69 : vector<1x16x128xf32>
    %71 = vector.extract_strided_slice %55 {offsets = [0, 15, 0], sizes = [1, 1, 128], strides = [1, 1, 1]} : vector<1x16x128xf32> to vector<1x1x128xf32>
    %72 = vector.extract_strided_slice %55 {offsets = [0, 0, 0], sizes = [1, 15, 128], strides = [1, 1, 1]} : vector<1x16x128xf32> to vector<1x15x128xf32>
    %73 = tpu.concatenate %71, %72 in 1 : vector<1x1x128xf32>, vector<1x15x128xf32> -> vector<1x16x128xf32>
    %cst_14 = arith.constant 0.000000e+00 : f32
    %74 = vector.broadcast %cst_14 : f32 to vector<1x16x128xf32>
    %75 = arith.select %9, %73, %74 : vector<1x16x128xi1>, vector<1x16x128xf32>
    %76 = vector.extract_strided_slice %55 {offsets = [0, 1, 0], sizes = [1, 15, 128], strides = [1, 1, 1]} : vector<1x16x128xf32> to vector<1x15x128xf32>
    %77 = vector.extract_strided_slice %55 {offsets = [0, 0, 0], sizes = [1, 1, 128], strides = [1, 1, 1]} : vector<1x16x128xf32> to vector<1x1x128xf32>
    %78 = tpu.concatenate %76, %77 in 1 : vector<1x15x128xf32>, vector<1x1x128xf32> -> vector<1x16x128xf32>
    %cst_15 = arith.constant 0.000000e+00 : f32
    %79 = vector.broadcast %cst_15 : f32 to vector<1x16x128xf32>
    %80 = arith.select %11, %78, %79 : vector<1x16x128xi1>, vector<1x16x128xf32>
    %81 = arith.subf %75, %80 : vector<1x16x128xf32>
    %82 = arith.mulf %70, %70 : vector<1x16x128xf32>
    %83 = arith.mulf %81, %81 : vector<1x16x128xf32>
    %84 = arith.addf %82, %83 : vector<1x16x128xf32>
    %cst_16 = arith.constant 1.600000e-03 : f32
    %85 = vector.broadcast %cst_16 : f32 to vector<1x16x128xf32>
    %86 = arith.addf %84, %85 : vector<1x16x128xf32>
    %87 = math.sqrt %86 : vector<1x16x128xf32>
    %cst_17 = arith.constant 2.500000e-01 : f32
    %88 = vector.broadcast %cst_17 : f32 to vector<1x16x128xf32>
    %89 = arith.mulf %88, %87 : vector<1x16x128xf32>
    %90 = arith.index_cast %13 : i32 to index
    %c0_18 = arith.constant 0 : index
    %c0_19 = arith.constant 0 : index
    %91 = vector.load %arg2[%90, %c0_18, %c0_19] : memref<1x16x128xf32, #tpu.memory_space<vmem>>, vector<1x16x128xf32>
    tpu.vector_store %arg2[%90, %c0_18, %c0_19], %89 {strides = array<i32>} : memref<1x16x128xf32, #tpu.memory_space<vmem>>, vector<1x16x128xf32>,
    %c1_i32_20 = arith.constant 1 : i32
    return
  }
  func.func @transform_0(%arg0: i32) -> (i32, i32, i32) {
    %c0_i32 = arith.constant 0 : i32
    %c0_i32_0 = arith.constant 0 : i32
    %c0_i32_1 = arith.constant 0 : i32
    return %arg0, %c0_i32, %c0_i32_0 : i32, i32, i32
  }
  func.func @transform_1(%arg0: i32) -> (i32, i32, i32) {
    %c0_i32 = arith.constant 0 : i32
    %c0_i32_0 = arith.constant 0 : i32
    %c0_i32_1 = arith.constant 0 : i32
    return %arg0, %c0_i32, %c0_i32_0 : i32, i32, i32
  }
}

</mosaic_0001>

<bundles_post_ra>
// kernel: tpu_custom_call.1
= control target key start
LH: loop header
LB: loop body
LE: loop exit
PB: predicated region body
PF: predicated region fallthrough
CT: control target
= control target key end

     0   :  { %6 = vsyncpa [#allocation3], 0  ;;  %s374_s0 = inlined_call_operand.hbm [shape: f32[1,16,128], index: 0, kind: input, shape index: {}]   ;;  %s375_s1 = inlined_call_operand.hbm [shape: f32[1,16,128], index: 1, kind: output, shape index: {}]  }
   0x1   :  { %7 = vsyncpa [#allocation4], 0  ;;  %s265_s6 = smov [#allocation2]   ;;  %s217_s10 = scalar_lea.hbm %s374_s0, 256 }
   0x2   :  { %s13_s7 = sshll.u32 %s265_s6, 4  ;;  %p218_p0 = scmp.ne.s32.totalorder %s374_s0, %s217_s10  ;;  %s14_s7 = int_to_ptr.vmem [resolvable:$true] %s13_s7 }
   0x3   :  { %p221_p1 = scmp.lt.u32.totalorder %s217_s10, %s374_s0 }
   0x5   :  { %p223_p2 = pnand %p221_p1, %p218_p0 }
   0x7   :  { %226 = shalt.err (!%p223_p2)
}
   0x8   :  { %s227_s15 = scalar_lea.vmem %s14_s7, 256  ;;  %p232_p4 = scmp.lt.s32.totalorder %s14_s7, %s14_s7 }
   0x9   :  { %p228_p3 = scmp.ne.s32.totalorder %s14_s7, %s227_s15  ;;  %p233_p5 = scmp.lt.s32.totalorder %s227_s15, %s227_s15 }
   0xb   :  { %p234_p6 = por %p233_p5, %p232_p4 }
   0xd   :  { %p235_p7 = pnand %p234_p6, %p228_p3 }
   0xf   :  { %238 = shalt.err (!%p235_p7)
}
  0x10   :  { %s266_s16 = smov 128   ;;  %s267_s17 = smov 8  }
  0x11   :  { %19 = dma.hbm_to_vmem [thread:$0]  %s374_s0, 256, %s14_s7, [#allocation3], %s266_s16, %s266_s16, %s267_s17  }
  0x12   :  { %261 = dma.done.wait [#allocation3], 256  }
  0x13   :  { %262 = vsyncadd [#allocation3], 4294967040  ;;  %v37_v0 = vld [vmem:[#allocation2] sm:$0xff]  ;;  %s268_s20 = smov 1   ;;  %s269_s21 = smov 127   ;;  %v38_v1 = vld [vmem:[#allocation2 + $0x8] sm:$0xff]  ;;  %v23_v2 = vlaneseq }
  0x14   :  { %41 = vrot.lane.b32.xlu0 %v37_v0, %s268_s20  ;;  %51 = vrot.lane.b32.xlu1 %v37_v0, %s269_s21  ;;  %vm65_vm2 = vcmask 1040384   ;;  %vm75_vm4 = vcmask 1046528   ;;  %s270_s0 = smov [#allocation5]  }
  0x15   :  { %v27_v3 = vand.u32 127, %v23_v2  ;;  %v310_v10 = vshrl.u32 %v23_v2, 7  ;;  %s195_s22 = sshll.u32 %s270_s0, 4  ;;  %s196_s22 = int_to_ptr.vmem [resolvable:$true] %s195_s22 }
  0x16   :  { %s239_s23 = scalar_lea.vmem %s196_s22, 256  ;;  %p244_p9 = scmp.lt.s32.totalorder %s196_s22, %s196_s22 }
  0x17   :  { %v28_v4 = vand.u32 15, %v27_v3  ;;  %v319_v17 = vadd.s32 8, %v310_v10  ;;  %vm31_vm5 = vcmp.ge.s32.totalorder %v310_v10, 1  ;;  %p240_p8 = scmp.ne.s32.totalorder %s196_s22, %s239_s23  ;;  %p245_p10 = scmp.lt.s32.totalorder %s239_s23, %s239_s23 }
  0x18   :  { %43 = vrot.lane.b32.xlu0 %v38_v1, %s268_s20  ;;  %53 = vrot.lane.b32.xlu1 %v38_v1, %s269_s21 }
  0x19   :  { %vm300_vm0 = vcmp.ge.s32.totalorder %v28_v4, 1  ;;  %vm304_vm1 = vcmp.le.s32.totalorder %v28_v4, 14  ;;  %vm34_vm3 = vcmp.le.s32.totalorder %v319_v17, 14  ;;  %p246_p11 = por %p245_p10, %p244_p9 }
  0x1b   :  { %p247_p12 = pnand %p246_p11, %p240_p8 }
  0x86   :  { %v42_v6 = vpop.permute.xlu0 %41  ;;  %v52_v8 = vpop.permute.xlu1 %51 }
  0x87   :  { %v47_v9 = vsel %vm300_vm0, %v42_v6, 0.0  ;;  %v57_v12 = vsel %vm304_vm1, %v52_v8, 0.0 }
  0x88   :  { %v49_v11 = vadd.f32 %v47_v9, %v37_v0 }
  0x8a   :  { %v44_v13 = vpop.permute.xlu0 %43  ;;  %v54_v14 = vpop.permute.xlu1 %53  ;;  %v59_v18 = vadd.f32 %v57_v12, %v49_v11 }
  0x8b   :  { %v48_v15 = vsel %vm300_vm0, %v44_v13, 0.0  ;;  %v58_v16 = vsel %vm304_vm1, %v54_v14, 0.0 }
  0x8c   :  { %v50_v19 = vadd.f32 %v48_v15, %v38_v1  ;;  %v66_v21 = vrot.slane %v59_v18, 7  ;;  %v76_v22 = vrot.slane %v59_v18, 1 }
  0x8e   :  { %v60_v20 = vadd.f32 %v58_v16, %v50_v19 }
  0x90   :  { %v62_v23 = vrot.slane %v60_v20, 7  ;;  %v77_v24 = vrot.slane %v60_v20, 1 }
  0x92   :  { %v67_v25 = vsel %vm65_vm2, %v66_v21, %v62_v23  ;;  %v82_v26 = vsel %vm75_vm4, %v77_v24, %v76_v22  ;;  %v70_v27 = vsel %vm65_vm2, %v62_v23, %v66_v21  ;;  %v78_v33 = vsel %vm75_vm4, %v76_v22, %v77_v24 }
  0x93   :  { %v74_v28 = vadd.f32 %v67_v25, %v60_v20  ;;  %v84_v29 = vsel %vm34_vm3, %v82_v26, 0.0  ;;  %v71_v30 = vsel %vm31_vm5, %v70_v27, 0.0 }
  0x94   :  { %v73_v31 = vadd.f32 %v71_v30, %v59_v18 }
  0x95   :  { %v86_v32 = vadd.f32 %v84_v29, %v74_v28 }
  0x96   :  { %v85_v34 = vadd.f32 %v78_v33, %v73_v31 }
  0x97   :  { %v88_v35 = vmul.f32 0.11111111, %v86_v32 }
  0x98   :  { %v87_v36 = vmul.f32 0.11111111, %v85_v34 }
  0x99   :  { %93 = vrot.lane.b32.xlu1 %v88_v35, %s268_s20  ;;  %v108_v40 = vmul.f32 2.0, %v88_v35 }
  0x9a   :  { %91 = vrot.lane.b32.xlu0 %v87_v36, %s268_s20  ;;  %v107_v42 = vmul.f32 2.0, %v87_v36 }
  0x9d   :  { %101 = vrot.lane.b32.xlu1 %v88_v35, %s269_s21 }
  0x9e   :  { %99 = vrot.lane.b32.xlu0 %v87_v36, %s269_s21 }
 0x10b   :  { %v94_v37 = vpop.permute.xlu1 %93 }
 0x10c   :  { %v98_v38 = vsel %vm300_vm0, %v94_v37, 0.0  ;;  %v92_v39 = vpop.permute.xlu0 %91 }
 0x10d   :  { %v97_v41 = vsel %vm300_vm0, %v92_v39, 0.0  ;;  %v110_v43 = vadd.f32 %v108_v40, %v98_v38 }
 0x10e   :  { %v109_v45 = vadd.f32 %v107_v42, %v97_v41 }
 0x10f   :  { %v102_v44 = vpop.permute.xlu1 %101 }
 0x110   :  { %v106_v46 = vsel %vm304_vm1, %v102_v44, 0.0  ;;  %v100_v47 = vpop.permute.xlu0 %99 }
 0x111   :  { %v112_v48 = vadd.f32 %v110_v43, %v106_v46  ;;  %v114_v49 = vsub.f32 %v98_v38, %v106_v46  ;;  %v105_v50 = vsel %vm304_vm1, %v100_v47, 0.0 }
 0x112   :  { %v111_v51 = vadd.f32 %v109_v45, %v105_v50  ;;  %v113_v52 = vsub.f32 %v97_v41, %v105_v50 }
 0x113   :  { %v116_v53 = vrot.slane %v114_v49, 7  ;;  %v131_v54 = vrot.slane %v114_v49, 1  ;;  %v142_v55 = vrot.slane %v112_v48, 7  ;;  %v153_v56 = vrot.slane %v112_v48, 1 }
 0x114   :  { %v119_v57 = vrot.slane %v113_v52, 7  ;;  %v130_v58 = vrot.slane %v113_v52, 1  ;;  %v127_v59 = vmul.f32 2.0, %v114_v49  ;;  %v145_v60 = vrot.slane %v111_v51, 7 }
 0x115   :  { %v152_v61 = vrot.slane %v111_v51, 1  ;;  %v126_v0 = vmul.f32 2.0, %v113_v52 }
 0x116   :  { %v120_v62 = vsel %vm65_vm2, %v119_v57, %v116_v53  ;;  %v123_v63 = vsel %vm65_vm2, %v116_v53, %v119_v57  ;;  %v136_v1 = vsel %vm75_vm4, %v131_v54, %v130_v58  ;;  %v146_v5 = vsel %vm65_vm2, %v145_v60, %v142_v55 }
 0x117   :  { %v124_v2 = vsel %vm31_vm5, %v123_v63, 0.0  ;;  %v129_v3 = vadd.f32 %v127_v59, %v120_v62  ;;  %v138_v4 = vsel %vm34_vm3, %v136_v1, 0.0  ;;  %v149_v7 = vsel %vm65_vm2, %v142_v55, %v145_v60 }
 0x118   :  { %v128_v6 = vadd.f32 %v126_v0, %v124_v2  ;;  %v154_v8 = vsel %vm75_vm4, %v152_v61, %v153_v56  ;;  %v158_v9 = vsel %vm75_vm4, %v153_v56, %v152_v61  ;;  %v132_v11 = vsel %vm75_vm4, %v130_v58, %v131_v54 }
 0x119   :  { %v140_v12 = vadd.f32 %v138_v4, %v129_v3  ;;  %v150_v13 = vsel %vm31_vm5, %v149_v7, 0.0  ;;  %v160_v14 = vsel %vm34_vm3, %v158_v9, 0.0 }
 0x11a   :  { %v139_v15 = vadd.f32 %v132_v11, %v128_v6  ;;  %v161_v16 = vsub.f32 %v150_v13, %v154_v8  ;;  %v162_v18 = vsub.f32 %v146_v5, %v160_v14 }
 0x11b   :  { %v164_v19 = vmul.f32 %v140_v12, %v140_v12 }
 0x11c   :  { %v163_v20 = vmul.f32 %v139_v15, %v139_v15  ;;  %v165_v21 = vmul.f32 %v161_v16, %v161_v16  ;;  %v166_v22 = vmul.f32 %v162_v18, %v162_v18 }
 0x11e   :  { %v167_v23 = vadd.f32 %v165_v21, %v163_v20  ;;  %v168_v24 = vadd.f32 %v166_v22, %v164_v19 }
 0x120   :  { %v169_v25 = vadd.f32 0.0016, %v167_v23  ;;  %v170_v26 = vadd.f32 0.0016, %v168_v24 }
 0x122   :  { %213 = vrsqrt.f32 %v169_v25  ;;  %vm173_vm6 = vcmp.eq.f32.partialorder %v169_v25, inf  ;;  %v176_v29 = vand.u32 2147483648, %v169_v25  ;;  %vm175_vm7 = vcmp.eq.f32.partialorder %v169_v25, 0.0 }
 0x123   :  { %215 = vrsqrt.f32 %v170_v26  ;;  %vm180_vm8 = vcmp.eq.f32.partialorder %v170_v26, inf  ;;  %v183_v31 = vand.u32 2147483648, %v170_v26  ;;  %vm182_vm9 = vcmp.eq.f32.partialorder %v170_v26, 0.0 }
 0x12c   :  { %v214_v27 = vpop.eup %213 }
 0x12d   :  { %v216_v28 = vpop.eup %215  ;;  %v172_v10 = vmul.f32 %v214_v27, %v169_v25 }
 0x12e   :  { %v179_v17 = vmul.f32 %v216_v28, %v170_v26 }
 0x12f   :  { %v174_v30 = vsel %vm173_vm6, %v169_v25, %v172_v10 }
 0x130   :  { %v177_v32 = vsel %vm175_vm7, %v176_v29, %v174_v30  ;;  %v181_v33 = vsel %vm180_vm8, %v170_v26, %v179_v17 }
 0x131   :  { %v184_v34 = vsel %vm182_vm9, %v183_v31, %v181_v33  ;;  %v185_v35 = vmul.f32 0.25, %v177_v32 }
 0x132   :  { %v186_v36 = vmul.f32 0.25, %v184_v34 }
 0x133   :  { %188 = vst [vmem:[#allocation5] sm:$0xff] %v185_v35 }
 0x134   :  { %189 = vst [vmem:[#allocation5 + $0x8] sm:$0xff] %v186_v36 }
 0x135   :  { %250 = shalt.err (!%p247_p12)
}
 0x136   :  { %s251_s26 = scalar_lea.hbm %s375_s1, 256 }
 0x137   :  { %p252_p13 = scmp.ne.s32.totalorder %s375_s1, %s251_s26  ;;  %p255_p0 = scmp.lt.u32.totalorder %s251_s26, %s375_s1 }
 0x139   :  { %p257_p1 = pnand %p255_p0, %p252_p13 }
 0x13b   :  { %260 = shalt.err (!%p257_p1)
}
 0x13c   :  { %201 = dma.vmem_to_hbm [thread:$0]  %s196_s22, 256, %s375_s1, [#allocation4], %s266_s16, %s266_s16, %s267_s17  }
 0x13d   :  { %263 = dma.done.wait [#allocation4], 256  }
 0x13e   :  { %264 = vsyncadd [#allocation4], 4294967040 }
 0x13f   :  { %205 = vsyncpa [#allocation3], 1 }
 0x140   :  { %206 = vsyncpa [#allocation4], 1 }

</bundles_post_ra>
